<compile_context>
chip_gen: v5e
topology: v5e:2x2
jax: 0.10.0
libtpu: 0.0.40
codegen_flags: <defaults>
</compile_context>

<pallas_src>
import functools

import jax
import jax.numpy as jnp
from jax.experimental import pallas as pl
from jax.experimental.pallas import tpu as pltpu

NEG_SLOPE = 0.01   # nn.LeakyReLU default negative_slope
DROP = 0.2         # unused at inference (identity)
LANE = 128
SUBLANE = 8


def _round_up(x, m):
    return (x + m - 1) // m * m


# ----------------------------- fused Pallas kernel -------------------------- #

def _make_fused_kernel(num_hidden):
    """Kernel args: x, (w, b) * num_hidden, w_head, b_head, out.

    All weights are (in_pad, out_pad) (transpose of PyTorch layout), biases
    (1, out_pad).  Everything is f32; intermediates never leave the chip.
    """
    def kernel(*refs):
        x_ref = refs[0]
        out_ref = refs[-1]
        h = x_ref[...]
        idx = 1
        for _ in range(num_hidden):
            w_ref = refs[idx]
            b_ref = refs[idx + 1]
            idx += 2
            y = jnp.dot(h, w_ref[...], preferred_element_type=jnp.float32) + b_ref[...]
            h = jnp.where(y >= 0.0, y, NEG_SLOPE * y)   # LeakyReLU (+ Dropout=identity)
        wh_ref = refs[idx]
        bh_ref = refs[idx + 1]
        # both heads packed into one wide matmul; output already f32 (no astype)
        out_ref[...] = (
            jnp.dot(h, wh_ref[...], preferred_element_type=jnp.float32) + bh_ref[...]
        )

    return kernel


# ------------------------- parameter init & padding ------------------------- #

def init_linear_params(key, in_dim, out_dim):
    """Matches PyTorch nn.Linear init U(-1/sqrt(in), 1/sqrt(in)); W stored (in, out)."""
    kw, kb = jax.random.split(key)
    bound = 1.0 / jnp.sqrt(jnp.float32(in_dim))
    w = jax.random.uniform(kw, (in_dim, out_dim), jnp.float32, -bound, bound)
    b = jax.random.uniform(kb, (1, out_dim), jnp.float32, -bound, bound)
    return w, b


def init_lvae_encoder_params(key, input_dim, latent_dim, hidden_sizes):
    keys = jax.random.split(key, len(hidden_sizes) + 2)
    hidden_params = []
    prev = input_dim
    for i, h in enumerate(hidden_sizes):
        hidden_params.append(init_linear_params(keys[i], prev, h))
        prev = h
    dim = hidden_sizes[-1] if len(hidden_sizes) != 0 else input_dim
    emb_params = init_linear_params(keys[-2], dim, latent_dim)
    lv_params = init_linear_params(keys[-1], dim, latent_dim)
    return hidden_params, emb_params, lv_params


def prepare_encoder_params(params, input_dim):
    """Zero-pad every feature dim up to a multiple of 128 and fuse the two heads
    into a single (D_pad, round_up(2L,128)) weight.  Returns arrays only."""
    hidden_params, (we, be), (wl, bl) = params

    in_dim = input_dim
    in_p = _round_up(max(in_dim, 1), LANE)
    padded_hidden = []
    for (w, b) in hidden_params:
        din, dout = w.shape
        dout_p = _round_up(dout, LANE)
        wp = jnp.zeros((in_p, dout_p), jnp.float32).at[:din, :dout].set(w)
        bp = jnp.zeros((1, dout_p), jnp.float32).at[:, :dout].set(b)
        padded_hidden.append((wp, bp))
        in_dim, in_p = dout, dout_p

    latent = we.shape[1]
    wh = jnp.concatenate([we, wl], axis=1)          # (D, 2L)
    bh = jnp.concatenate([be, bl], axis=1)          # (1, 2L)
    head_p = _round_up(2 * latent, LANE)
    whp = jnp.zeros((in_p, head_p), jnp.float32).at[:in_dim, : 2 * latent].set(wh)
    bhp = jnp.zeros((1, head_p), jnp.float32).at[:, : 2 * latent].set(bh)

    return padded_hidden, (whp, bhp)


# ------------------------------- forward pass -------------------------------- #

def lvae_encoder_forward(prepared, x, latent_dim, batch_tile):
    """prepared = (padded_hidden_list, (w_head_pad, b_head_pad)); x: (B, input_dim)."""
    padded_hidden, (whp, bhp) = prepared
    B, Din = x.shape
    in_p = padded_hidden[0][0].shape[0] if padded_hidden else whp.shape[0]
    head_p = whp.shape[1]

    # batch tiling: multiple of 8 sublanes; whole grid marked "parallel" (v7x 2 TCs)
    tb = min(_round_up(B, SUBLANE), batch_tile)
    b_pad = _round_up(B, tb)
    xp = jnp.zeros((b_pad, in_p), jnp.float32).at[:B, :Din].set(x.astype(jnp.float32))

    num_hidden = len(padded_hidden)
    kernel = _make_fused_kernel(num_hidden)

    in_specs = [pl.BlockSpec((tb, in_p), lambda i: (i, 0))]
    args = [xp]
    for (w, b) in padded_hidden:
        in_specs.append(pl.BlockSpec(w.shape, lambda i: (0, 0)))  # weights stay resident
        in_specs.append(pl.BlockSpec(b.shape, lambda i: (0, 0)))
        args += [w, b]
    in_specs.append(pl.BlockSpec(whp.shape, lambda i: (0, 0)))
    in_specs.append(pl.BlockSpec(bhp.shape, lambda i: (0, 0)))
    args += [whp, bhp]

    out = pl.pallas_call(
        kernel,
        out_shape=jax.ShapeDtypeStruct((b_pad, head_p), jnp.float32),
        grid_spec=pltpu.PrefetchScalarGridSpec(
            num_scalar_prefetch=0,
            grid=(b_pad // tb,),
            in_specs=in_specs,
            out_specs=pl.BlockSpec((tb, head_p), lambda i: (i, 0)),
        ),
        compiler_params=pltpu.CompilerParams(
            dimension_semantics=("parallel",),
            vmem_limit_bytes=64 * 1024 * 1024,
        ),
    )(*args)

    emb = out[:B, :latent_dim]
    log_var = out[:B, latent_dim : 2 * latent_dim]
    return emb, log_var


# pure-JAX reference (uses the raw, unpadded parameters)
def lvae_encoder_ref(params, x):
    hidden_params, (we, be), (wl, bl) = params
    out = x
    for (w, b) in hidden_params:
        y = out @ w + b
        out = jnp.where(y >= 0.0, y, NEG_SLOPE * y)
    return out @ we + be, out @ wl + bl


if __name__ == "__main__":
    # small shapes consistent with the module
    batch, input_dim, latent_dim = 8, 32, 16
    hidden_sizes = [64, 32]

    key = jax.random.PRNGKey(0)
    kx, kp = jax.random.split(key)
    x = jax.random.normal(kx, (batch, input_dim), jnp.float32)

    params = init_lvae_encoder_params(kp, input_dim, latent_dim, hidden_sizes)
    prepared = prepare_encoder_params(params, input_dim)

    fwd = jax.jit(lvae_encoder_forward, static_argnums=(2, 3))
    emb, log_var = fwd(prepared, x, latent_dim, 128)
    jax.block_until_ready((emb, log_var))

    emb_ref, lv_ref = lvae_encoder_ref(params, x)
    assert emb.shape == (batch, latent_dim) and log_var.shape == (batch, latent_dim)
    assert jnp.allclose(emb, emb_ref, atol=1e-5, rtol=1e-5)
    assert jnp.allclose(log_var, lv_ref, atol=1e-5, rtol=1e-5)

    print("KERNEL_OK")
</pallas_src>

<mosaic_0001>
module attributes {stable_mosaic.version = 11 : i64} {
  func.func @kernel(%arg0: i32, %arg1: memref<8x128xf32, #tpu.memory_space<vmem>>, %arg2: memref<128x128xf32, #tpu.memory_space<vmem>>, %arg3: memref<1x128xf32, #tpu.memory_space<vmem>>, %arg4: memref<128x128xf32, #tpu.memory_space<vmem>>, %arg5: memref<1x128xf32, #tpu.memory_space<vmem>>, %arg6: memref<128x128xf32, #tpu.memory_space<vmem>>, %arg7: memref<1x128xf32, #tpu.memory_space<vmem>>, %arg8: memref<8x128xf32, #tpu.memory_space<vmem>>) attributes {dimension_semantics = [#tpu.dimension_semantics<parallel>], iteration_bounds = array<i64: 1>, scalar_prefetch = 0 : i64, scratch_operands = 0 : i64, tpu.core_type = #tpu.core_type<tc>, window_params = [{transform_indices = @transform_0, window_bounds = array<i64: 8, 128>}, {pipeline_mode = #tpu.pipeline_mode<synchronous>, transform_indices = @transform_1, window_bounds = array<i64: 128, 128>}, {pipeline_mode = #tpu.pipeline_mode<synchronous>, transform_indices = @transform_2, window_bounds = array<i64: 1, 128>}, {pipeline_mode = #tpu.pipeline_mode<synchronous>, transform_indices = @transform_3, window_bounds = array<i64: 128, 128>}, {pipeline_mode = #tpu.pipeline_mode<synchronous>, transform_indices = @transform_4, window_bounds = array<i64: 1, 128>}, {pipeline_mode = #tpu.pipeline_mode<synchronous>, transform_indices = @transform_5, window_bounds = array<i64: 128, 128>}, {pipeline_mode = #tpu.pipeline_mode<synchronous>, transform_indices = @transform_6, window_bounds = array<i64: 1, 128>}, {transform_indices = @transform_7, window_bounds = array<i64: 8, 128>}]} {
    %c0 = arith.constant 0 : index
    %c0_0 = arith.constant 0 : index
    %0 = vector.load %arg1[%c0, %c0_0] : memref<8x128xf32, #tpu.memory_space<vmem>>, vector<8x128xf32>
    %c0_1 = arith.constant 0 : index
    %c0_2 = arith.constant 0 : index
    %1 = vector.load %arg2[%c0_1, %c0_2] : memref<128x128xf32, #tpu.memory_space<vmem>>, vector<128x128xf32>
    %cst = arith.constant dense<0.000000e+00> : vector<8x128xf32>
    %2 = tpu.matmul %0, %1, %cst {dimension_numbers = #tpu.dot_dimension_numbers<[1], [0], [0], [1], [0, 0, 1, 1], [], []>} : vector<8x128xf32>, vector<128x128xf32>, vector<8x128xf32> -> vector<8x128xf32>
    %c0_3 = arith.constant 0 : index
    %c0_4 = arith.constant 0 : index
    %3 = vector.load %arg3[%c0_3, %c0_4] : memref<1x128xf32, #tpu.memory_space<vmem>>, vector<1x128xf32>
    %4 = vector.broadcast %3 : vector<1x128xf32> to vector<8x128xf32>
    %5 = arith.addf %2, %4 : vector<8x128xf32>
    %cst_5 = arith.constant 0.000000e+00 : f32
    %6 = vector.broadcast %cst_5 : f32 to vector<8x128xf32>
    %7 = arith.cmpf oge, %5, %6 : vector<8x128xf32>
    %cst_6 = arith.constant 0.00999999977 : f32
    %8 = vector.broadcast %cst_6 : f32 to vector<8x128xf32>
    %9 = arith.mulf %8, %5 : vector<8x128xf32>
    %10 = arith.select %7, %5, %9 : vector<8x128xi1>, vector<8x128xf32>
    %c0_7 = arith.constant 0 : index
    %c0_8 = arith.constant 0 : index
    %11 = vector.load %arg4[%c0_7, %c0_8] : memref<128x128xf32, #tpu.memory_space<vmem>>, vector<128x128xf32>
    %cst_9 = arith.constant dense<0.000000e+00> : vector<8x128xf32>
    %12 = tpu.matmul %10, %11, %cst_9 {dimension_numbers = #tpu.dot_dimension_numbers<[1], [0], [0], [1], [0, 0, 1, 1], [], []>} : vector<8x128xf32>, vector<128x128xf32>, vector<8x128xf32> -> vector<8x128xf32>
    %c0_10 = arith.constant 0 : index
    %c0_11 = arith.constant 0 : index
    %13 = vector.load %arg5[%c0_10, %c0_11] : memref<1x128xf32, #tpu.memory_space<vmem>>, vector<1x128xf32>
    %14 = vector.broadcast %13 : vector<1x128xf32> to vector<8x128xf32>
    %15 = arith.addf %12, %14 : vector<8x128xf32>
    %cst_12 = arith.constant 0.000000e+00 : f32
    %16 = vector.broadcast %cst_12 : f32 to vector<8x128xf32>
    %17 = arith.cmpf oge, %15, %16 : vector<8x128xf32>
    %cst_13 = arith.constant 0.00999999977 : f32
    %18 = vector.broadcast %cst_13 : f32 to vector<8x128xf32>
    %19 = arith.mulf %18, %15 : vector<8x128xf32>
    %20 = arith.select %17, %15, %19 : vector<8x128xi1>, vector<8x128xf32>
    %c0_14 = arith.constant 0 : index
    %c0_15 = arith.constant 0 : index
    %21 = vector.load %arg6[%c0_14, %c0_15] : memref<128x128xf32, #tpu.memory_space<vmem>>, vector<128x128xf32>
    %cst_16 = arith.constant dense<0.000000e+00> : vector<8x128xf32>
    %22 = tpu.matmul %20, %21, %cst_16 {dimension_numbers = #tpu.dot_dimension_numbers<[1], [0], [0], [1], [0, 0, 1, 1], [], []>} : vector<8x128xf32>, vector<128x128xf32>, vector<8x128xf32> -> vector<8x128xf32>
    %c0_17 = arith.constant 0 : index
    %c0_18 = arith.constant 0 : index
    %23 = vector.load %arg7[%c0_17, %c0_18] : memref<1x128xf32, #tpu.memory_space<vmem>>, vector<1x128xf32>
    %24 = vector.broadcast %23 : vector<1x128xf32> to vector<8x128xf32>
    %25 = arith.addf %22, %24 : vector<8x128xf32>
    %c0_19 = arith.constant 0 : index
    %c0_20 = arith.constant 0 : index
    %26 = vector.load %arg8[%c0_19, %c0_20] : memref<8x128xf32, #tpu.memory_space<vmem>>, vector<8x128xf32>
    tpu.vector_store %arg8[%c0_19, %c0_20], %25 {strides = array<i32>} : memref<8x128xf32, #tpu.memory_space<vmem>>, vector<8x128xf32>,
    return
  }
  func.func @transform_0(%arg0: i32) -> (i32, i32) {
    %c0_i32 = arith.constant 0 : i32
    %c0_i32_0 = arith.constant 0 : i32
    return %arg0, %c0_i32 : i32, i32
  }
  func.func @transform_1(%arg0: i32) -> (i32, i32) {
    %c0_i32 = arith.constant 0 : i32
    %c0_i32_0 = arith.constant 0 : i32
    %c0_i32_1 = arith.constant 0 : i32
    return %c0_i32, %c0_i32_0 : i32, i32
  }
  func.func @transform_2(%arg0: i32) -> (i32, i32) {
    %c0_i32 = arith.constant 0 : i32
    %c0_i32_0 = arith.constant 0 : i32
    %c0_i32_1 = arith.constant 0 : i32
    return %c0_i32, %c0_i32_0 : i32, i32
  }
  func.func @transform_3(%arg0: i32) -> (i32, i32) {
    %c0_i32 = arith.constant 0 : i32
    %c0_i32_0 = arith.constant 0 : i32
    %c0_i32_1 = arith.constant 0 : i32
    return %c0_i32, %c0_i32_0 : i32, i32
  }
  func.func @transform_4(%arg0: i32) -> (i32, i32) {
    %c0_i32 = arith.constant 0 : i32
    %c0_i32_0 = arith.constant 0 : i32
    %c0_i32_1 = arith.constant 0 : i32
    return %c0_i32, %c0_i32_0 : i32, i32
  }
  func.func @transform_5(%arg0: i32) -> (i32, i32) {
    %c0_i32 = arith.constant 0 : i32
    %c0_i32_0 = arith.constant 0 : i32
    %c0_i32_1 = arith.constant 0 : i32
    return %c0_i32, %c0_i32_0 : i32, i32
  }
  func.func @transform_6(%arg0: i32) -> (i32, i32) {
    %c0_i32 = arith.constant 0 : i32
    %c0_i32_0 = arith.constant 0 : i32
    %c0_i32_1 = arith.constant 0 : i32
    return %c0_i32, %c0_i32_0 : i32, i32
  }
  func.func @transform_7(%arg0: i32) -> (i32, i32) {
    %c0_i32 = arith.constant 0 : i32
    %c0_i32_0 = arith.constant 0 : i32
    return %arg0, %c0_i32 : i32, i32
  }
}

</mosaic_0001>

<bundles_post_ra>
// kernel: lvae_encoder_forward.1
= control target key start
LH: loop header
LB: loop body
LE: loop exit
PB: predicated region body
PF: predicated region fallthrough
CT: control target
= control target key end

     0   :  { %12 = vsyncpa [#allocation3], 0  ;;  %s360_s0 = inlined_call_operand.vmem [shape: f32[8,128], index: 0, kind: input, shape index: {}]   ;;  %s361_s1 = inlined_call_operand.hbm [shape: f32[128,128], index: 1, kind: input, shape index: {}]   ;;  %s362_s2 = inlined_call_operand.vmem [shape: f32[1,128], index: 2, kind: input, shape index: {}]   ;;  %s363_s3 = inlined_call_operand.hbm [shape: f32[128,128], index: 3, kind: input, shape index: {}]   ;;  %s364_s4 = inlined_call_operand.vmem [shape: f32[1,128], index: 4, kind: input, shape index: {}]   ;;  %s365_s5 = inlined_call_operand.hbm [shape: f32[128,128], index: 5, kind: input, shape index: {}]   ;;  %s366_s6 = inlined_call_operand.vmem [shape: f32[1,128], index: 6, kind: input, shape index: {}]   ;;  %s367_s7 = inlined_call_operand.vmem [shape: f32[8,128], index: 7, kind: output, shape index: {}]  }
   0x1   :  { %13 = vsyncpa [#allocation5], 0  ;;  %s35_s26 = sshll.u32 %s363_s3, 4  ;;  %s291_s27 = smov [#allocation4]   ;;  %s36_s26 = int_to_ptr.hbm [resolvable:$true] %s35_s26 }
   0x2   :  { %s37_s28 = sshll.u32 %s291_s27, 4  ;;  %s20_s8 = sshll.u32 %s361_s1, 4  ;;  %s38_s28 = int_to_ptr.vmem [resolvable:$true] %s37_s28  ;;  %s21_s8 = int_to_ptr.hbm [resolvable:$true] %s20_s8 }
   0x3   :  { %s292_s9 = smov 128   ;;  %s293_s10 = smov 8  }
   0x4   :  { %43 = dma.hbm_to_vmem [thread:$0]  %s36_s26, 2048, %s38_s28, [#allocation5], %s292_s9, %s292_s9, %s293_s10  }
   0x5   :  { %s294_s11 = smov [#allocation2]   ;;  %s50_s15 = sshll.u32 %s365_s5, 4  ;;  %s51_s15 = int_to_ptr.hbm [resolvable:$true] %s50_s15 }
   0x6   :  { %s22_s12 = sshll.u32 %s294_s11, 4  ;;  %s295_s3 = smov [#allocation6]   ;;  %s23_s12 = int_to_ptr.vmem [resolvable:$true] %s22_s12 }
   0x7   :  { %28 = dma.hbm_to_vmem [thread:$0]  %s21_s8, 2048, %s23_s12, [#allocation3], %s292_s9, %s292_s9, %s293_s10  }
   0x8   :  { %s52_s16 = sshll.u32 %s295_s3, 4  ;;  %s53_s16 = int_to_ptr.vmem [resolvable:$true] %s52_s16 }
   0x9   :  { %58 = dma.hbm_to_vmem [thread:$0]  %s51_s15, 2048, %s53_s16, [#allocation5], %s292_s9, %s292_s9, %s293_s10  }
   0xa   :  { %287 = dma.done.wait [#allocation3], 2048  }
   0xb   :  { %288 = vsyncadd [#allocation3], 4294965248 }
   0xc   :  { %289 = dma.done.wait [#allocation5], 4096  }
   0xd   :  { %290 = vsyncadd [#allocation5], 4294963200  ;;  %v89_v0 = vld [vmem:[#allocation2 + $0x78] sm:$0xff]  ;;  %v88_v1 = vld [vmem:[#allocation2 + $0x70] sm:$0xff] }
   0xe   :  { %94 = vmatpush.msra.mxu0 %v89_v0  ;;  %v87_v2 = vld [vmem:[#allocation2 + $0x68] sm:$0xff]  ;;  %v86_v3 = vld [vmem:[#allocation2 + $0x60] sm:$0xff]  ;;  %v132_v4 = vld [vmem:[#allocation4 + $0x78] sm:$0xff] }
   0xf   :  { %v85_v5 = vld [vmem:[#allocation2 + $0x58] sm:$0xff]  ;;  %137 = vmatpush.msra.mxu1 %v132_v4  ;;  %v131_v6 = vld [vmem:[#allocation4 + $0x70] sm:$0xff]  ;;  %v130_v7 = vld [vmem:[#allocation4 + $0x68] sm:$0xff] }
  0x10   :  { %95 = vmatpush.msra.mxu0 %v88_v1  ;;  %v84_v8 = vld [vmem:[#allocation2 + $0x50] sm:$0xff]  ;;  %v129_v9 = vld [vmem:[#allocation4 + $0x60] sm:$0xff]  ;;  %v83_v10 = vld [vmem:[#allocation2 + $0x48] sm:$0xff] }
  0x11   :  { %138 = vmatpush.msra.mxu1 %v131_v6  ;;  %v128_v11 = vld [vmem:[#allocation4 + $0x58] sm:$0xff]  ;;  %v82_v12 = vld [vmem:[#allocation2 + $0x40] sm:$0xff]  ;;  %v127_v13 = vld [vmem:[#allocation4 + $0x50] sm:$0xff] }
  0x12   :  { %96 = vmatpush.msra.mxu0 %v87_v2  ;;  %v81_v14 = vld [vmem:[#allocation2 + $0x38] sm:$0xff]  ;;  %v126_v15 = vld [vmem:[#allocation4 + $0x48] sm:$0xff]  ;;  %v80_v16 = vld [vmem:[#allocation2 + $0x30] sm:$0xff] }
  0x13   :  { %139 = vmatpush.msra.mxu1 %v130_v7  ;;  %v125_v17 = vld [vmem:[#allocation4 + $0x40] sm:$0xff]  ;;  %v79_v18 = vld [vmem:[#allocation2 + $0x28] sm:$0xff]  ;;  %v124_v19 = vld [vmem:[#allocation4 + $0x38] sm:$0xff] }
  0x14   :  { %97 = vmatpush.msra.mxu0 %v86_v3  ;;  %v78_v20 = vld [vmem:[#allocation2 + $0x20] sm:$0xff]  ;;  %v123_v21 = vld [vmem:[#allocation4 + $0x30] sm:$0xff]  ;;  %v77_v22 = vld [vmem:[#allocation2 + $0x18] sm:$0xff] }
  0x15   :  { %140 = vmatpush.msra.mxu1 %v129_v9  ;;  %v122_v23 = vld [vmem:[#allocation4 + $0x28] sm:$0xff]  ;;  %v76_v24 = vld [vmem:[#allocation2 + $0x10] sm:$0xff]  ;;  %v121_v25 = vld [vmem:[#allocation4 + $0x20] sm:$0xff] }
  0x16   :  { %98 = vmatpush.msra.mxu0 %v85_v5  ;;  %v75_v26 = vld [vmem:[#allocation2 + $0x8] sm:$0xff]  ;;  %v120_v27 = vld [vmem:[#allocation4 + $0x18] sm:$0xff]  ;;  %v74_v28 = vld [vmem:[#allocation2] sm:$0xff] }
  0x17   :  { %141 = vmatpush.msra.mxu1 %v128_v11  ;;  %v73_v29 = vld [vmem:[%s360_s0] sm:$0xff]  ;;  %v119_v30 = vld [vmem:[#allocation4 + $0x10] sm:$0xff]  ;;  %v118_v31 = vld [vmem:[#allocation4 + $0x8] sm:$0xff] }
  0x18   :  { %99 = vmatpush.msra.mxu0 %v84_v8  ;;  %v117_v32 = vld [vmem:[#allocation4] sm:$0xff]  ;;  %v175_v33 = vld [vmem:[#allocation6 + $0x78] sm:$0xff]  ;;  %v174_v34 = vld [vmem:[#allocation6 + $0x70] sm:$0xff] }
  0x19   :  { %142 = vmatpush.msra.mxu1 %v127_v13  ;;  %180 = vmatpush.msra.mxu2 %v175_v33  ;;  %v173_v35 = vld [vmem:[#allocation6 + $0x68] sm:$0xff]  ;;  %v172_v36 = vld [vmem:[#allocation6 + $0x60] sm:$0xff]  ;;  %v171_v37 = vld [vmem:[#allocation6 + $0x58] sm:$0xff] }
  0x1a   :  { %100 = vmatpush.msra.mxu0 %v83_v10  ;;  %v170_v38 = vld [vmem:[#allocation6 + $0x50] sm:$0xff]  ;;  %v169_v39 = vld [vmem:[#allocation6 + $0x48] sm:$0xff]  ;;  %v168_v40 = vld [vmem:[#allocation6 + $0x40] sm:$0xff] }
  0x1b   :  { %143 = vmatpush.msra.mxu1 %v126_v15  ;;  %181 = vmatpush.msra.mxu2 %v174_v34  ;;  %v167_v41 = vld [vmem:[#allocation6 + $0x38] sm:$0xff]  ;;  %v166_v42 = vld [vmem:[#allocation6 + $0x30] sm:$0xff]  ;;  %v165_v43 = vld [vmem:[#allocation6 + $0x28] sm:$0xff] }
  0x1c   :  { %101 = vmatpush.msra.mxu0 %v82_v12  ;;  %v164_v44 = vld [vmem:[#allocation6 + $0x20] sm:$0xff]  ;;  %v163_v45 = vld [vmem:[#allocation6 + $0x18] sm:$0xff]  ;;  %v162_v51 = vld [vmem:[#allocation6 + $0x10] sm:$0xff] }
  0x1d   :  { %144 = vmatpush.msra.mxu1 %v125_v17  ;;  %182 = vmatpush.msra.mxu2 %v173_v35  ;;  %v212_v46 = vld [vmem:[%s362_s2] ss:$0 sm:$0xff]  ;;  %v161_v52 = vld [vmem:[#allocation6 + $0x8] sm:$0xff] }
  0x1e   :  { %102 = vmatpush.msra.mxu0 %v81_v14  ;;  %v160_v53 = vld [vmem:[#allocation6] sm:$0xff] }
  0x1f   :  { %145 = vmatpush.msra.mxu1 %v124_v19  ;;  %183 = vmatpush.msra.mxu2 %v172_v36  ;;  %v213_v54 = vld [vmem:[%s364_s4] ss:$0 sm:$0xff] }
  0x20   :  { %103 = vmatpush.msra.mxu0 %v80_v16  ;;  %v214_v59 = vld [vmem:[%s366_s6] ss:$0 sm:$0xff] }
  0x21   :  { %146 = vmatpush.msra.mxu1 %v123_v21  ;;  %184 = vmatpush.msra.mxu2 %v171_v37 }
  0x22   :  { %104 = vmatpush.msra.mxu0 %v79_v18 }
  0x23   :  { %147 = vmatpush.msra.mxu1 %v122_v23  ;;  %185 = vmatpush.msra.mxu2 %v170_v38 }
  0x24   :  { %105 = vmatpush.msra.mxu0 %v78_v20 }
  0x25   :  { %148 = vmatpush.msra.mxu1 %v121_v25  ;;  %186 = vmatpush.msra.mxu2 %v169_v39 }
  0x26   :  { %106 = vmatpush.msra.mxu0 %v77_v22 }
  0x27   :  { %149 = vmatpush.msra.mxu1 %v120_v27  ;;  %187 = vmatpush.msra.mxu2 %v168_v40 }
  0x28   :  { %107 = vmatpush.msra.mxu0 %v76_v24 }
  0x29   :  { %150 = vmatpush.msra.mxu1 %v119_v30  ;;  %188 = vmatpush.msra.mxu2 %v167_v41 }
  0x2a   :  { %108 = vmatpush.msra.mxu0 %v75_v26 }
  0x2b   :  { %151 = vmatpush.msra.mxu1 %v118_v31  ;;  %189 = vmatpush.msra.mxu2 %v166_v42 }
  0x2c   :  { %109 = vmatpush.msra.mxu0 %v74_v28 }
  0x2d   :  { %110 = vmatmul.f32.vlgmr.msra.gmra.mxu0 %v73_v29  ;;  %152 = vmatpush.msra.mxu1 %v117_v32 }
  0x2e   :  { %190 = vmatpush.msra.mxu2 %v165_v43 }
  0x30   :  { %191 = vmatpush.msra.mxu2 %v164_v44 }
  0x32   :  { %192 = vmatpush.msra.mxu2 %v163_v45 }
  0x34   :  { %193 = vmatpush.msra.mxu2 %v162_v51 }
  0x36   :  { %194 = vmatpush.msra.mxu2 %v161_v52 }
  0x38   :  { %195 = vmatpush.msra.mxu2 %v160_v53 }
  0xaa   :  { %v111_v47 = vpop.f32.mrf.mxu0 }
  0xab   :  { %v112_v48 = vadd.f32 %v212_v46, %v111_v47 }
  0xad   :  { %vm114_vm0 = vcmp.ge.f32.partialorder %v112_v48, 0.0  ;;  %v115_v49 = vmul.f32 0.01, %v112_v48 }
  0xaf   :  { %v116_v50 = vsel %vm114_vm0, %v112_v48, %v115_v49 }
  0xb0   :  { %153 = vmatmul.f32.vlgmr.msra.gmra.mxu1 %v116_v50 }
 0x12d   :  { %v154_v55 = vpop.f32.mrf.mxu1 }
 0x12e   :  { %v155_v56 = vadd.f32 %v213_v54, %v154_v55 }
 0x130   :  { %vm157_vm1 = vcmp.ge.f32.partialorder %v155_v56, 0.0  ;;  %v158_v57 = vmul.f32 0.01, %v155_v56 }
 0x132   :  { %v159_v58 = vsel %vm157_vm1, %v155_v56, %v158_v57 }
 0x133   :  { %196 = vmatmul.f32.vlgmr.msra.gmra.mxu2 %v159_v58 }
 0x1b6   :  { %v197_v60 = vpop.f32.mrf.mxu2 }
 0x1b7   :  { %v198_v61 = vadd.f32 %v214_v59, %v197_v60 }
 0x1b9   :  { %200 = vst [vmem:[%s367_s7] sm:$0xff] %v198_v61 }
 0x1ba   :  { %205 = vsyncpa [#allocation3], 1 }
 0x1bb   :  { %206 = vsyncpa [#allocation5], 1 }

</bundles_post_ra>
